<compile_context>
chip_gen: v6e
topology: v6e:2x2x1
jax: 0.10.0
libtpu: 0.0.40
codegen_flags: <defaults>
</compile_context>

<pallas_src>
import functools
import math

import jax
import jax.numpy as jnp
from jax import lax
from jax.experimental import pallas as pl
from jax.experimental.pallas import tpu as pltpu


# ----------------------------------------------------------------------------
# Weight-matrix construction (plain JAX glue, matches PyTorch semantics)
# ----------------------------------------------------------------------------
def _bilinear_weight_matrix(out_size, in_size, align_corners):
    """Row-stochastic (out_size, in_size) matrix reproducing PyTorch's
    F.interpolate 1-D linear weights (half-pixel when align_corners=False)."""
    dst = jnp.arange(out_size, dtype=jnp.float32)
    if align_corners:
        if out_size > 1:
            src = dst * (in_size - 1) / (out_size - 1)
        else:
            src = jnp.zeros_like(dst)          # PyTorch: scale = 0 -> src = 0
    else:
        scale = in_size / out_size
        src = (dst + 0.5) * scale - 0.5
        src = jnp.maximum(src, 0.0)            # PyTorch clamps negative coords
    src = jnp.minimum(src, float(in_size - 1))
    lo = jnp.clip(jnp.floor(src).astype(jnp.int32), 0, in_size - 1)
    hi = jnp.clip(lo + 1, 0, in_size - 1)
    frac = src - lo.astype(jnp.float32)
    w = jnp.zeros((out_size, in_size), dtype=jnp.float32)
    rows = jnp.arange(out_size)
    w = w.at[rows, lo].add(1.0 - frac)
    w = w.at[rows, hi].add(frac)
    return w


def _nearest_weight_matrix(out_size, in_size):
    """(out_size, in_size) selection matrix for PyTorch 'nearest' mode
    (src = floor(dst * in/out))."""
    dst = jnp.arange(out_size, dtype=jnp.float32)
    src = jnp.clip(jnp.floor(dst * (in_size / out_size)).astype(jnp.int32),
                   0, in_size - 1)
    w = jnp.zeros((out_size, in_size), dtype=jnp.float32)
    w = w.at[jnp.arange(out_size), src].set(1.0)
    return w


# ----------------------------------------------------------------------------
# Pallas kernels: block of B planes -> Wy @ x_plane @ Wx^T
# ----------------------------------------------------------------------------
def _resize_block_kernel_fast(x_ref, wy_ref, wyt_ref, wxt_ref, o_ref):
    # x_ref  : (B, H_in,  W_in )  native dtype
    # wy_ref : (H_out, H_in)      unused on this path
    # wyt_ref: (H_in,  H_out)
    # wxt_ref: (W_in,  W_out)
    # o_ref  : (B, H_out, W_out)
    del wy_ref
    b, h_in, w_in = x_ref.shape
    h_out = wyt_ref.shape[1]
    w_out = wxt_ref.shape[1]

    x = x_ref[...]

    # Pass 1 -- width: one fat 2-D MXU matmul over all B planes,
    #   (B*H_in, W_in) @ (W_in, W_out) -> (B*H_in, W_out), f32 accumulation.
    t = jnp.dot(x.reshape(b * h_in, w_in), wxt_ref[...],
                preferred_element_type=jnp.float32)
    t = t.reshape(b, h_in, w_out).astype(x.dtype)

    # Pass 2 -- height: transpose each plane on the XLU (otherwise idle) so
    # H_in becomes the contraction dim, then again ONE fat 2-D MXU matmul
    # with M = B*W_out (no broadcast of Wy, no B tiny batched matmuls):
    #   (B*W_out, H_in) @ (H_in, H_out) -> (B*W_out, H_out).
    tt = jnp.swapaxes(t, 1, 2)                       # (B, W_out, H_in)
    u = jnp.dot(tt.reshape(b * w_out, h_in), wyt_ref[...],
                preferred_element_type=jnp.float32)
    u = u.reshape(b, w_out, h_out).astype(o_ref.dtype)
    o_ref[...] = jnp.swapaxes(u, 1, 2)               # (B, H_out, W_out)


def _resize_block_kernel_safe(x_ref, wy_ref, wyt_ref, wxt_ref, o_ref):
    # Previously-validated body (fat width matmul + batched height matmul).
    # Used as an automatic fallback if the fast body fails to lower for a
    # given shape/dtype (e.g. alignment-unfriendly transposes/reshapes).
    del wyt_ref
    b, h_in, w_in = x_ref.shape
    h_out = wy_ref.shape[0]
    w_out = wxt_ref.shape[1]

    x = x_ref[...]
    t = jnp.dot(x.reshape(b * h_in, w_in), wxt_ref[...],
                preferred_element_type=jnp.float32)
    t = t.reshape(b, h_in, w_out).astype(x.dtype)

    if b == 1:
        out = jnp.dot(wy_ref[...], t[0],
                      preferred_element_type=jnp.float32)[None]
    else:
        wy_b = jnp.broadcast_to(wy_ref[...], (b, h_out, h_in))
        out = lax.dot_general(
            wy_b, t,
            dimension_numbers=(((2,), (1,)), ((0,), (0,))),
            preferred_element_type=jnp.float32)

    o_ref[...] = out.astype(o_ref.dtype)


# ----------------------------------------------------------------------------
# VMEM sizing (counts f32 temporaries; derived from the chip's capacity)
# ----------------------------------------------------------------------------
def _vmem_capacity_bytes():
    try:
        info = pltpu.get_tpu_info()
        cap = int(getattr(info, "vmem_capacity_bytes", 0) or 0)
        if cap > 0:
            return cap
    except Exception:
        pass
    return 64 * 1024 * 1024          # conservative default: v7x per-TC VMEM


def _plane_vmem_bytes(h_in, w_in, h_out, w_out, itemsize):
    """Per-(n,c)-plane VMEM footprint of one grid step: double-buffered
    input/output blocks PLUS the in-kernel f32 temporaries."""
    io_blocks = 2 * (h_in * w_in + h_out * w_out) * itemsize
    pass1 = h_in * w_out * (4 + itemsize)               # f32 result + cast
    pass2 = (h_in * w_out * itemsize                    # transposed copy
             + h_out * w_out * (4 + 2 * itemsize))      # f32 result + casts
    return io_blocks + pass1 + pass2


def _choose_plane_batch(nc, h_in, w_in, h_out, w_out, itemsize, vmem_cap):
    """How many (n, c) planes each grid step processes.

    Big enough to amortize the ~0.35us/step pipeline overhead and give the
    MXU a real M dimension; small enough that blocks + f32 temporaries stay
    well inside VMEM on every generation (v7x: 64 MiB/TC, v5e/v6e: 128 MiB).
    """
    usable = int(vmem_cap * 0.45)     # headroom for weights/compiler scratch
    per_plane = max(_plane_vmem_bytes(h_in, w_in, h_out, w_out, itemsize), 1)
    b = max(1, usable // per_plane)
    b = min(b, nc)
    # Target >= 4 grid steps so each of v7x's 2 TensorCores gets >= 2
    # pipelined steps (no-op on v5e/v6e single-core chips).
    if nc >= 4:
        b = min(b, -(-nc // 4))
    elif nc > 1:
        b = min(b, (nc + 1) // 2)
    return int(max(b, 1))


# ----------------------------------------------------------------------------
# pallas_call wrapper
# ----------------------------------------------------------------------------
@functools.partial(jax.jit, static_argnums=(4, 5, 6, 7, 8))
def _resize_planes(x_flat, wy, wyt, wxt, h_out, w_out, block_b, vmem_limit,
                   fast):
    nc, h_in, w_in = x_flat.shape
    dtype = x_flat.dtype
    itemsize = jnp.dtype(dtype).itemsize
    grid = pl.cdiv(nc, block_b)

    flops = 2 * nc * h_in * w_out * (w_in + h_out)
    bytes_accessed = (nc * (h_in * w_in + h_out * w_out)
                      + 2 * h_out * h_in + w_in * w_out) * itemsize

    kernel = _resize_block_kernel_fast if fast else _resize_block_kernel_safe
    return pl.pallas_call(
        kernel,
        out_shape=jax.ShapeDtypeStruct((nc, h_out, w_out), dtype),
        grid_spec=pltpu.PrefetchScalarGridSpec(
            num_scalar_prefetch=0,
            grid=(grid,),
            in_specs=[
                pl.BlockSpec((block_b, h_in, w_in), lambda i: (i, 0, 0)),
                pl.BlockSpec((h_out, h_in), lambda i: (0, 0)),
                pl.BlockSpec((h_in, h_out), lambda i: (0, 0)),
                pl.BlockSpec((w_in, w_out), lambda i: (0, 0)),
            ],
            out_specs=pl.BlockSpec((block_b, h_out, w_out),
                                   lambda i: (i, 0, 0)),
        ),
        compiler_params=pltpu.CompilerParams(
            dimension_semantics=("parallel",),
            vmem_limit_bytes=vmem_limit),
        cost_estimate=pl.CostEstimate(flops=flops, transcendentals=0,
                                      bytes_accessed=bytes_accessed),
    )(x_flat, wy, wyt, wxt)


# Fast-path viability cache (probed once per static signature).
_FAST_PATH_OK = {}


def _run_resize(x_flat, wy, wyt, wxt, h_out, w_out, block_b, vmem_limit):
    key = (tuple(x_flat.shape), str(x_flat.dtype), h_out, w_out,
           block_b, vmem_limit)
    ok = _FAST_PATH_OK.get(key)
    tracer_types = getattr(jax.core, "Tracer", ())
    concrete = not isinstance(x_flat, tracer_types)
    if ok is None and concrete:
        try:
            out = _resize_planes(x_flat, wy, wyt, wxt, h_out, w_out,
                                 block_b, vmem_limit, True)
            jax.block_until_ready(out)
            _FAST_PATH_OK[key] = True
            return out
        except Exception:
            _FAST_PATH_OK[key] = False
            ok = False
    if ok:
        return _resize_planes(x_flat, wy, wyt, wxt, h_out, w_out,
                              block_b, vmem_limit, True)
    return _resize_planes(x_flat, wy, wyt, wxt, h_out, w_out,
                          block_b, vmem_limit, False)


# ----------------------------------------------------------------------------
# Module-equivalent wrapper
# ----------------------------------------------------------------------------
class Interpolate:
    """JAX/Pallas port of torchfun.nn.Interpolate (4-D NCHW inputs).

    Supported modes: 'bilinear' (default) and 'nearest'.
    """
    # TODO(synk): 'linear' (3D), 'trilinear' (5D) and 'area' modes are not
    # implemented in the Pallas port.
    # TODO(synk): very large planes (whose output does not fit a VMEM block)
    # would additionally need tiling of Wy over h_out.

    def __init__(self, size=None, scale_factor=None, mode='bilinear',
                 align_corners=None):
        if size is None and scale_factor is None:
            print('Torchfun: warning: size and scale_factor are both None, '
                  'the interpolation parmeters are not specified!')
        self.size = size
        self.scale_factor = scale_factor
        self.mode = mode
        # PyTorch treats align_corners=None as False for bilinear.
        self.align_corners = bool(align_corners)

    def _output_size(self, h_in, w_in):
        if self.size is not None:
            if isinstance(self.size, (tuple, list)):
                return int(self.size[0]), int(self.size[1])
            return int(self.size), int(self.size)
        sf = self.scale_factor
        if isinstance(sf, (tuple, list)):
            sfh, sfw = sf
        else:
            sfh = sfw = sf
        # PyTorch: output = floor(input * scale_factor)
        return (int(math.floor(h_in * float(sfh))),
                int(math.floor(w_in * float(sfw))))

    def __call__(self, x):
        # layout: NCHW
        n, c, h_in, w_in = x.shape
        h_out, w_out = self._output_size(h_in, w_in)
        if self.mode == 'bilinear':
            wy = _bilinear_weight_matrix(h_out, h_in, self.align_corners)
            wx = _bilinear_weight_matrix(w_out, w_in, self.align_corners)
        elif self.mode == 'nearest':
            wy = _nearest_weight_matrix(h_out, h_in)
            wx = _nearest_weight_matrix(w_out, w_in)
        else:
            raise NotImplementedError(f"mode={self.mode!r} not supported")

        orig_dtype = x.dtype
        if jnp.issubdtype(orig_dtype, jnp.floating):
            compute_dtype = orig_dtype           # keep bf16/f16/f32 native
        else:
            compute_dtype = jnp.float32          # ints: compute in f32
        # NOTE: weights/intermediates are kept in the compute dtype for MXU
        # speed; bf16 inputs therefore see slightly larger error than
        # PyTorch's f32-internal math (documented, within test tolerance).

        nc = n * c
        itemsize = jnp.dtype(compute_dtype).itemsize
        x_flat = x.reshape(nc, h_in, w_in).astype(compute_dtype)
        wy_c = wy.astype(compute_dtype)
        wyt_c = wy.T.astype(compute_dtype)
        wxt_c = wx.T.astype(compute_dtype)

        vmem_cap = _vmem_capacity_bytes()
        block_b = _choose_plane_batch(nc, h_in, w_in, h_out, w_out,
                                      itemsize, vmem_cap)
        vmem_limit = int(vmem_cap * 0.625)   # 80 MiB on v5e/v6e, 40 MiB on v7x

        out = _run_resize(x_flat, wy_c, wyt_c, wxt_c, h_out, w_out,
                          block_b, vmem_limit)
        out = out.reshape(n, c, h_out, w_out)
        if out.dtype != orig_dtype:
            if jnp.issubdtype(orig_dtype, jnp.integer):
                out = jnp.rint(out)          # round-to-nearest, not truncate
            out = out.astype(orig_dtype)
        return out


# ----------------------------------------------------------------------------
# Demo / self-check
# ----------------------------------------------------------------------------
if __name__ == "__main__":
    key = jax.random.PRNGKey(0)
    x = jax.random.normal(key, (2, 4, 16, 16), dtype=jnp.float32)

    # 1) Module default: bilinear, align_corners=None (-> False), 2x upsample.
    y = jax.block_until_ready(
        Interpolate(scale_factor=2, mode='bilinear', align_corners=None)(x))
    assert y.shape == (2, 4, 32, 32), y.shape
    wy = _bilinear_weight_matrix(32, 16, False)
    wx = _bilinear_weight_matrix(32, 16, False)
    ref = jnp.einsum('oi,ncij,pj->ncop', wy, x, wx)
    assert jnp.allclose(y, ref, atol=1e-5, rtol=1e-5), \
        float(jnp.max(jnp.abs(y - ref)))

    # 2) Explicit size + align_corners=True (non-square output).
    y2 = jax.block_until_ready(
        Interpolate(size=(24, 40), mode='bilinear', align_corners=True)(x))
    wy2 = _bilinear_weight_matrix(24, 16, True)
    wx2 = _bilinear_weight_matrix(40, 16, True)
    ref2 = jnp.einsum('oi,ncij,pj->ncop', wy2, x, wx2)
    assert y2.shape == (2, 4, 24, 40), y2.shape
    assert jnp.allclose(y2, ref2, atol=1e-5, rtol=1e-5)

    # 3) nearest 2x == pixel replication.
    y3 = jax.block_until_ready(Interpolate(scale_factor=2, mode='nearest')(x))
    ref3 = jnp.repeat(jnp.repeat(x, 2, axis=2), 2, axis=3)
    assert y3.shape == (2, 4, 32, 32)
    assert jnp.allclose(y3, ref3, atol=1e-6)

    # 4) bf16 input stays bf16 end-to-end (native-dtype fast path).
    xb = x.astype(jnp.bfloat16)
    y4 = jax.block_until_ready(Interpolate(scale_factor=2, mode='bilinear')(xb))
    assert y4.dtype == jnp.bfloat16 and y4.shape == (2, 4, 32, 32)
    assert float(jnp.max(jnp.abs(y4.astype(jnp.float32) - ref))) < 0.1

    # 5) Exercise a grid with a partial trailing plane-block (NC=6, B=4).
    x5 = jax.random.normal(jax.random.PRNGKey(1), (2, 3, 16, 16), jnp.float32)
    x5f = x5.reshape(6, 16, 16)
    vmem_limit = int(_vmem_capacity_bytes() * 0.625)
    y5 = jax.block_until_ready(
        _run_resize(x5f, wy, wy.T, wx.T, 32, 32, 4, vmem_limit))
    ref5 = jnp.einsum('oi,ncij,pj->ncop', wy, x5, wx).reshape(6, 32, 32)
    assert jnp.allclose(y5, ref5, atol=1e-5, rtol=1e-5)

    print("KERNEL_OK")
</pallas_src>

<mosaic_0001>
module attributes {stable_mosaic.version = 11 : i64} {
  func.func @_resize_block_kernel_fast(%arg0: i32, %arg1: memref<2x16x16xf32, #tpu.memory_space<vmem>>, %arg2: memref<32x16xf32, #tpu.memory_space<vmem>>, %arg3: memref<16x32xf32, #tpu.memory_space<vmem>>, %arg4: memref<16x32xf32, #tpu.memory_space<vmem>>, %arg5: memref<2x32x32xf32, #tpu.memory_space<vmem>>) attributes {dimension_semantics = [#tpu.dimension_semantics<parallel>], iteration_bounds = array<i64: 4>, scalar_prefetch = 0 : i64, scratch_operands = 0 : i64, tpu.core_type = #tpu.core_type<tc>, window_params = [{transform_indices = @transform_0, window_bounds = array<i64: 2, 16, 16>}, {pipeline_mode = #tpu.pipeline_mode<synchronous>, transform_indices = @transform_1, window_bounds = array<i64: 32, 16>}, {pipeline_mode = #tpu.pipeline_mode<synchronous>, transform_indices = @transform_2, window_bounds = array<i64: 16, 32>}, {pipeline_mode = #tpu.pipeline_mode<synchronous>, transform_indices = @transform_3, window_bounds = array<i64: 16, 32>}, {transform_indices = @transform_4, window_bounds = array<i64: 2, 32, 32>}]} {
    %c0 = arith.constant 0 : index
    %c0_0 = arith.constant 0 : index
    %c0_1 = arith.constant 0 : index
    %0 = vector.load %arg1[%c0, %c0_0, %c0_1] : memref<2x16x16xf32, #tpu.memory_space<vmem>>, vector<2x16x16xf32>
    %1 = vector.shape_cast %0 : vector<2x16x16xf32> to vector<32x16xf32>
    %c0_2 = arith.constant 0 : index
    %c0_3 = arith.constant 0 : index
    %2 = vector.load %arg4[%c0_2, %c0_3] : memref<16x32xf32, #tpu.memory_space<vmem>>, vector<16x32xf32>
    %cst = arith.constant dense<0.000000e+00> : vector<32x32xf32>
    %3 = tpu.matmul %1, %2, %cst {dimension_numbers = #tpu.dot_dimension_numbers<[1], [0], [0], [1], [0, 0, 1, 1], [], []>} : vector<32x16xf32>, vector<16x32xf32>, vector<32x32xf32> -> vector<32x32xf32>
    %4 = vector.shape_cast %3 : vector<32x32xf32> to vector<2x16x32xf32>
    %5 = tpu.transpose %4, [0, 2, 1] : vector<2x16x32xf32> -> vector<2x32x16xf32>
    %6 = vector.shape_cast %5 : vector<2x32x16xf32> to vector<64x16xf32>
    %c0_4 = arith.constant 0 : index
    %c0_5 = arith.constant 0 : index
    %7 = vector.load %arg3[%c0_4, %c0_5] : memref<16x32xf32, #tpu.memory_space<vmem>>, vector<16x32xf32>
    %cst_6 = arith.constant dense<0.000000e+00> : vector<64x32xf32>
    %8 = tpu.matmul %6, %7, %cst_6 {dimension_numbers = #tpu.dot_dimension_numbers<[1], [0], [0], [1], [0, 0, 1, 1], [], []>} : vector<64x16xf32>, vector<16x32xf32>, vector<64x32xf32> -> vector<64x32xf32>
    %9 = vector.shape_cast %8 : vector<64x32xf32> to vector<2x32x32xf32>
    %10 = tpu.transpose %9, [0, 2, 1] : vector<2x32x32xf32> -> vector<2x32x32xf32>
    %c0_7 = arith.constant 0 : index
    %c0_8 = arith.constant 0 : index
    %c0_9 = arith.constant 0 : index
    %11 = vector.load %arg5[%c0_7, %c0_8, %c0_9] : memref<2x32x32xf32, #tpu.memory_space<vmem>>, vector<2x32x32xf32>
    tpu.vector_store %arg5[%c0_7, %c0_8, %c0_9], %10 {strides = array<i32>} : memref<2x32x32xf32, #tpu.memory_space<vmem>>, vector<2x32x32xf32>,
    return
  }
  func.func @transform_0(%arg0: i32) -> (i32, i32, i32) {
    %c0_i32 = arith.constant 0 : i32
    %c0_i32_0 = arith.constant 0 : i32
    %c0_i32_1 = arith.constant 0 : i32
    return %arg0, %c0_i32, %c0_i32_0 : i32, i32, i32
  }
  func.func @transform_1(%arg0: i32) -> (i32, i32) {
    %c0_i32 = arith.constant 0 : i32
    %c0_i32_0 = arith.constant 0 : i32
    %c0_i32_1 = arith.constant 0 : i32
    return %c0_i32, %c0_i32_0 : i32, i32
  }
  func.func @transform_2(%arg0: i32) -> (i32, i32) {
    %c0_i32 = arith.constant 0 : i32
    %c0_i32_0 = arith.constant 0 : i32
    %c0_i32_1 = arith.constant 0 : i32
    return %c0_i32, %c0_i32_0 : i32, i32
  }
  func.func @transform_3(%arg0: i32) -> (i32, i32) {
    %c0_i32 = arith.constant 0 : i32
    %c0_i32_0 = arith.constant 0 : i32
    %c0_i32_1 = arith.constant 0 : i32
    return %c0_i32, %c0_i32_0 : i32, i32
  }
  func.func @transform_4(%arg0: i32) -> (i32, i32, i32) {
    %c0_i32 = arith.constant 0 : i32
    %c0_i32_0 = arith.constant 0 : i32
    %c0_i32_1 = arith.constant 0 : i32
    return %arg0, %c0_i32, %c0_i32_0 : i32, i32, i32
  }
}

module attributes {stable_mosaic.version = 11 : i64} {
  func.func @_resize_block_kernel_safe(%arg0: i32, %arg1: memref<2x16x16xf32, #tpu.memory_space<vmem>>, %arg2: memref<32x16xf32, #tpu.memory_space<vmem>>, %arg3: memref<16x32xf32, #tpu.memory_space<vmem>>, %arg4: memref<16x32xf32, #tpu.memory_space<vmem>>, %arg5: memref<2x32x32xf32, #tpu.memory_space<vmem>>) attributes {dimension_semantics = [#tpu.dimension_semantics<parallel>], iteration_bounds = array<i64: 4>, scalar_prefetch = 0 : i64, scratch_operands = 0 : i64, tpu.core_type = #tpu.core_type<tc>, window_params = [{transform_indices = @transform_0, window_bounds = array<i64: 2, 16, 16>}, {pipeline_mode = #tpu.pipeline_mode<synchronous>, transform_indices = @transform_1, window_bounds = array<i64: 32, 16>}, {pipeline_mode = #tpu.pipeline_mode<synchronous>, transform_indices = @transform_2, window_bounds = array<i64: 16, 32>}, {pipeline_mode = #tpu.pipeline_mode<synchronous>, transform_indices = @transform_3, window_bounds = array<i64: 16, 32>}, {transform_indices = @transform_4, window_bounds = array<i64: 2, 32, 32>}]} {
    %c0 = arith.constant 0 : index
    %c0_0 = arith.constant 0 : index
    %c0_1 = arith.constant 0 : index
    %0 = vector.load %arg1[%c0, %c0_0, %c0_1] : memref<2x16x16xf32, #tpu.memory_space<vmem>>, vector<2x16x16xf32>
    %1 = vector.shape_cast %0 : vector<2x16x16xf32> to vector<32x16xf32>
    %c0_2 = arith.constant 0 : index
    %c0_3 = arith.constant 0 : index
    %2 = vector.load %arg4[%c0_2, %c0_3] : memref<16x32xf32, #tpu.memory_space<vmem>>, vector<16x32xf32>
    %cst = arith.constant dense<0.000000e+00> : vector<32x32xf32>
    %3 = tpu.matmul %1, %2, %cst {dimension_numbers = #tpu.dot_dimension_numbers<[1], [0], [0], [1], [0, 0, 1, 1], [], []>} : vector<32x16xf32>, vector<16x32xf32>, vector<32x32xf32> -> vector<32x32xf32>
    %4 = vector.shape_cast %3 : vector<32x32xf32> to vector<2x16x32xf32>
    %c0_4 = arith.constant 0 : index
    %c0_5 = arith.constant 0 : index
    %5 = vector.load %arg2[%c0_4, %c0_5] : memref<32x16xf32, #tpu.memory_space<vmem>>, vector<32x16xf32>
    %6 = vector.shape_cast %5 : vector<32x16xf32> to vector<1x32x16xf32>
    %7 = vector.broadcast %6 : vector<1x32x16xf32> to vector<2x32x16xf32>
    %cst_6 = arith.constant dense<0.000000e+00> : vector<2x32x32xf32>
    %8 = tpu.matmul %7, %4, %cst_6 {dimension_numbers = #tpu.dot_dimension_numbers<[2], [1], [1], [2], [0, 0, 0, 1, 1, 2], [0], [0]>} : vector<2x32x16xf32>, vector<2x16x32xf32>, vector<2x32x32xf32> -> vector<2x32x32xf32>
    %c0_7 = arith.constant 0 : index
    %c0_8 = arith.constant 0 : index
    %c0_9 = arith.constant 0 : index
    %9 = vector.load %arg5[%c0_7, %c0_8, %c0_9] : memref<2x32x32xf32, #tpu.memory_space<vmem>>, vector<2x32x32xf32>
    tpu.vector_store %arg5[%c0_7, %c0_8, %c0_9], %8 {strides = array<i32>} : memref<2x32x32xf32, #tpu.memory_space<vmem>>, vector<2x32x32xf32>,
    return
  }
  func.func @transform_0(%arg0: i32) -> (i32, i32, i32) {
    %c0_i32 = arith.constant 0 : i32
    %c0_i32_0 = arith.constant 0 : i32
    %c0_i32_1 = arith.constant 0 : i32
    return %arg0, %c0_i32, %c0_i32_0 : i32, i32, i32
  }
  func.func @transform_1(%arg0: i32) -> (i32, i32) {
    %c0_i32 = arith.constant 0 : i32
    %c0_i32_0 = arith.constant 0 : i32
    %c0_i32_1 = arith.constant 0 : i32
    return %c0_i32, %c0_i32_0 : i32, i32
  }
  func.func @transform_2(%arg0: i32) -> (i32, i32) {
    %c0_i32 = arith.constant 0 : i32
    %c0_i32_0 = arith.constant 0 : i32
    %c0_i32_1 = arith.constant 0 : i32
    return %c0_i32, %c0_i32_0 : i32, i32
  }
  func.func @transform_3(%arg0: i32) -> (i32, i32) {
    %c0_i32 = arith.constant 0 : i32
    %c0_i32_0 = arith.constant 0 : i32
    %c0_i32_1 = arith.constant 0 : i32
    return %c0_i32, %c0_i32_0 : i32, i32
  }
  func.func @transform_4(%arg0: i32) -> (i32, i32, i32) {
    %c0_i32 = arith.constant 0 : i32
    %c0_i32_0 = arith.constant 0 : i32
    %c0_i32_1 = arith.constant 0 : i32
    return %arg0, %c0_i32, %c0_i32_0 : i32, i32, i32
  }
}

</mosaic_0001>

<bundles_post_ra>
// kernel: _resize_planes.1
= control target key start
LH: loop header
LB: loop body
LE: loop exit
PB: predicated region body
PF: predicated region fallthrough
CT: control target
= control target key end

     0   :  { %9 = vsyncpa [#allocation3], 0  ;;  %s1118_s0 = inlined_call_operand.hbm [shape: f32[8,16,16], index: 0, kind: input, shape index: {}]   ;;  %s1119_s1 = inlined_call_operand.vmem [shape: f32[32,16], index: 1, kind: input, shape index: {}]   ;;  %s1120_s2 = inlined_call_operand.vmem [shape: f32[16,32], index: 2, kind: input, shape index: {}]   ;;  %s1121_s3 = inlined_call_operand.vmem [shape: f32[16,32], index: 3, kind: input, shape index: {}]   ;;  %s1122_s4 = inlined_call_operand.hbm [shape: f32[8,32,32], index: 4, kind: output, shape index: {}]  }
   0x1   :  { %11 = vsyncpa [#allocation3 + $0x1], 0 }
   0x2   :  { %12 = vsyncpa [#allocation4], 0 }
   0x3   :  { %14 = vsyncpa [#allocation4 + $0x1], 0  ;;  %s933_s15 = smov 0   ;;  %s935_s16 = smov 0  }
   0x4   :  { %s937_s17 = smov 0   ;;  %s939_s1 = smov 0  }
   0x5 LB: > { %s954_s18 = sadd.s32 4294967295, %s900_s1   ;;  %s679_s19 = sadd.s32 4294967294, %s900_s1   ;;  %s900_s1 = sphi %s939_s1, %s1136_s1   ;;  %s896_s17 = sphi %s937_s17, %s1135_s17   ;;  %s892_s16 = sphi %s935_s16, %s1134_s16   ;;  %s888_s15 = sphi %s933_s15, %s1133_s15  }
   0x6   : > { %s958_s20 = sadd.s32 1, %s900_s1   ;;  %s27_s21 = sadd.s32 1, %s896_s17 }
   0x7   : > { %s24_s22 = ssub.s32 %s900_s1, %s958_s20  ;;  %p34_p0 = scmp.ne.s32.totalorder %s896_s17, %s892_s16 }
   0x8   : > { %p25_p1 = scmp.eq.s32.totalorder %s24_s22, 0  ;;  %p35_p2 = scmp.eq.s32.totalorder %s900_s1, 0 }
   0x9   : > { %p40_p3 = scmp.ne.s32.totalorder %s892_s16, %s888_s15  ;;  %p41_p4 = scmp.eq.s32.totalorder %s954_s18, 0 }
   0xa   : > { %s970_s23 = scalar_select %p25_p1, %s896_s17, %s27_s21  }
   0xb   : > { %p972_p5 = por %p35_p2, %p34_p0  ;;  %p976_p6 = por %p41_p4, %p40_p3 }
   0xc   : > { %p127_p7 = scmp.eq.s32.totalorder %s954_s18, 3  ;;  %p133_p8 = scmp.eq.s32.totalorder %s679_s19, 3 }
   0xd   : > { %s1126_s25 = scalar_select %p976_p6, 1, 0 }
   0xe   : > { %p769_p9 = scmp.lt.s32.totalorder %s900_s1, 4  ;;  %p982_p10 = por %p127_p7, %p34_p0 }
   0xf   : > { %p986_p11 = por %p133_p8, %p40_p3  ;;  %s162_s28 = sand.u32 1, %s896_s17  }
  0x10   : > { %s1127_s26 = scalar_select %p982_p10, 1, 0 }
  0x11   : > { %s1128_s27 = scalar_select %p986_p11, 1, 0 }
  0x12   : > { %s708_s29 = sshll.u32 %s900_s1, 9  ;;  %s682_s30 = sshll.u32 %s162_s28, 5 }
  0x13   : > { %s995_s7 = scalar_lea.hbm %s1118_s0, %s708_s29  ;;  %s166_s8 = scalar_lea.vmem [#allocation2], %s682_s30 }
  0x14   : > { %s174_s9 = sshll.u32 %s166_s8, 4  ;;  %p999_p12 = pnand %p769_p9, %p972_p5  ;;  %s1003_s9 = int_to_ptr.vmem [resolvable:$true] %s174_s9 }
  0x15   : > { %s1005_s11 = scalar_lea.sflag [#allocation3], %s162_s28  ;;  %s808_s12 = scalar_lea.hbm %s995_s7, 512 }
  0x16   : > { %p809_p13 = scmp.ne.s32.totalorder %s995_s7, %s808_s12  ;;  %p810_p0 = pneg %p999_p12 }
  0x17   : > { %s813_s19 = scalar_lea.hbm %s1118_s0, 2048  ;;  %p814_p3 = scmp.lt.s32.totalorder %s995_s7, %s1118_s0 }
  0x18   : > { %p811_p1 = pnand %p810_p0, %p809_p13  ;;  %p815_p4 = scmp.lt.s32.totalorder %s813_s19, %s808_s12 }
  0x1a   : > { %p812_p2 = pneg %p811_p1  ;;  %p816_p5 = por %p815_p4, %p814_p3 }
  0x1c   : > { %p817_p7 = pnand %p816_p5, %p812_p2 }
  0x1e   : > { %820 = shalt.err (!%p817_p7)
}
  0x1f   : > { %s821_s24 = scalar_lea.vmem %s1003_s9, 512  ;;  %s902_s28 = smov [#allocation2]  }
  0x20   : > { %p822_p8 = scmp.ne.s32.totalorder %s1003_s9, %s821_s24  ;;  %s826_s29 = sshll.u32 %s902_s28, 4  ;;  %s827_s29 = int_to_ptr.vmem [resolvable:$false] %s826_s29 }
  0x21   : > { %s828_s30 = scalar_lea.vmem %s827_s29, 1024  ;;  %p829_p1 = scmp.lt.s32.totalorder %s1003_s9, %s827_s29 }
  0x22   : > { %p824_p9 = pnand %p822_p8, %p810_p0  ;;  %p830_p11 = scmp.lt.s32.totalorder %s828_s30, %s821_s24 }
  0x24   : > { %p825_p13 = pneg %p824_p9  ;;  %p831_p10 = por %p830_p11, %p829_p1 }
  0x26   : > { %p832_p6 = pnand %p831_p10, %p825_p13 }
  0x28   : > { %835 = shalt.err (!%p832_p6)
}
  0x29   : > { %s903_s5 = smov 128   ;;  %s904_s6 = smov 8  }
  0x2a   : > { %764 = dma.hbm_to_vmem [thread:$0]  (!%p999_p12), %s995_s7, 512, %s1003_s9, %s1005_s11, %s903_s5, %s903_s5, %s904_s6  }
  0x2b   : > { %p686_p0 = scmp.ge.s32.totalorder %s900_s1, 1  ;;  %p182_p2 = scmp.lt.s32.totalorder %s900_s1, 5 }
  0x2d   : > { %p183_p3 = pnand %p686_p0, %p182_p2 }
  0x2e   : > { %s1029_s8 = sand.u32 (!%p183_p3), 1, %s892_s16   ;;  %p1130_p6 = scmp.ne.s32.totalorder (!%p183_p3), %s1126_s25, 0 }
  0x2f   : > { %186 = sbr.rel (%p183_p3) target bundleno = 740 (0x2e4), region = 36  ;;  %s687_s12 = sshll.u32 (!%p183_p3), %s1029_s8, 5 }
  0x30   : > { %s189_s13 = scalar_lea.sflag (!%p183_p3), [#allocation3], %s1029_s8  ;;  %s192_s14 = scalar_lea.vmem (!%p183_p3), [#allocation2], %s687_s12 }
  0x34   : > { %879 = dma.done.wait (%p1130_p6), %s189_s13, 512  }
  0x35   : > { %881 = vsyncadd (%p1130_p6), %s189_s13, 4294966784  ;;  %vm225_vm0 = vcmask 130048   ;;  %v224_v0 = vld [vmem:[%s1121_s3 + $0x8] sm:$0xff]  ;;  %v223_v1 = vld [vmem:[%s1121_s3] sm:$0xff]  ;;  %s688_s24 = sshll.u32 %s1029_s8, 6  ;;  %vm582_vm1 = vcmask 261120  }
  0x36   : > { %v219_v2 = vld [vmem:[%s192_s14] sm:$0xff]  ;;  %727 = vmatprep.subr.mxu0 %v224_v0  ;;  %v220_v3 = vld [vmem:[%s192_s14 + $0x8] sm:$0xff]  ;;  %v221_v4 = vld [vmem:[%s192_s14 + $0x10] sm:$0xff]  ;;  %s216_s28 = scalar_lea.vmem [#allocation5], %s688_s24  ;;  %s710_s30 = sshll.u32 %s954_s18, 10 }
  0x37   : > { %731 = vmatprep.mubr.msk.f32.mxu0 %vm225_vm0, %v219_v2  ;;  %728 = vmatpush3.msra.mxu0 %v224_v0  ;;  %v222_v5 = vld [vmem:[%s192_s14 + $0x18] sm:$0xff]  ;;  %v388_v6 = vld [vmem:[%s1120_s2 + $0x8] sm:$0xff]  ;;  %v387_v8 = vld [vmem:[%s1120_s2] sm:$0xff]  ;;  %s606_s29 = sshll.u32 %s216_s28, 4  ;;  %s1075_s12 = scalar_lea.hbm %s1122_s4, %s710_s30  ;;  %s1069_s29 = int_to_ptr.vmem [resolvable:$true] %s606_s29 }
  0x38   : > { %729 = vmatprep.subr.mxu0 %v223_v1  ;;  %753 = vmatprep.subr.mxu1 %v388_v6  ;;  %s592_s13 = scalar_lea.sflag [#allocation4], %s1029_s8  ;;  %s836_s14 = scalar_lea.vmem %s1069_s29, 1024 }
  0x39   : > { %730 = vmatpush3.msra.mxu0 %v223_v1  ;;  %755 = vmatpush3.msra.mxu1 %v388_v6  ;;  %p837_p10 = scmp.ne.s32.totalorder %s1069_s29, %s836_s14  ;;  %p1131_p11 = scmp.ne.s32.totalorder %s1127_s26, 0 }
  0x3a   : > { %732 = vmatmul.mubr.msk.f32.vlgmr.msra.gmra.mxu0 %vm225_vm0, %v220_v3  ;;  %737 = vmatprep.subr.mxu0 %v388_v6  ;;  %s905_s18 = smov [#allocation5]  }
  0x3b   : > { %734 = vmatprep.mubr.msk.f32.mxu0 %vm225_vm0, %v221_v4  ;;  %738 = vmatpush3.msra.mxu0 %v388_v6  ;;  %p838_p12 = pnand %p837_p10, %p1131_p11  ;;  %s840_s7 = sshll.u32 %s905_s18, 4  ;;  %s841_s7 = int_to_ptr.vmem [resolvable:$false] %s840_s7 }
  0x3c   : > { %739 = vmatprep.subr.mxu0 %v387_v8  ;;  %754 = vmatprep.subr.mxu1 %v387_v8  ;;  %s842_s9 = scalar_lea.vmem %s841_s7, 2048  ;;  %p843_p5 = scmp.lt.s32.totalorder %s1069_s29, %s841_s7 }
  0x3d   : > { %740 = vmatpush3.msra.mxu0 %v387_v8  ;;  %756 = vmatpush3.msra.mxu1 %v387_v8  ;;  %p839_p4 = pneg %p838_p12  ;;  %p844_p7 = scmp.lt.s32.totalorder %s842_s9, %s836_s14 }
  0x3e   : > { %735 = vmatmul.mubr.msk.f32.gmra.mxu0 %vm225_vm0, %v222_v5 }
  0x3f   : > { %p845_p8 = por %p844_p7, %p843_p5 }
  0x41   : > { %p846_p9 = pnand %p845_p8, %p839_p4 }
  0xfa   : > { %v733_v7 = vpop.f32.mrf.mxu0 }
  0xfc   : > { %v304_v9 = vpop.f32.mrf.mxu0 }
  0xfd   : > { %323 = vxpose.xlu0.b32.start [1/2] (short) (narrow) %v304_v9, 32 }
  0xfe   : > { %v736_v10 = vpop.f32.mrf.mxu0 }
 0x100   : > { %v314_v11 = vpop.f32.mrf.mxu0 }
 0x101   : > { %324 = vxpose.xlu0.b32.end [2/2] (short) (narrow) %v733_v7, 32  ;;  %355 = vxpose.xlu1.b32.start [1/2] (short) (narrow) %v314_v11, 32 }
 0x105   : > { %356 = vxpose.xlu1.b32.end [2/2] (short) (narrow) %v736_v10, 32 }
 0x179   : > { %v339_v12 = vpop.trf.xlu0 }
 0x17a   : > { %741 = vmatprep.mubr.msk.f32.mxu0 %vm225_vm0, %v339_v12 }
 0x17d   : > { %v340_v13 = vpop.trf.xlu0  ;;  %v371_v14 = vpop.trf.xlu1 }
 0x17e   : > { %742 = vmatmul.mubr.msk.f32.vlgmr.msra.gmra.mxu0 %vm225_vm0, %v340_v13 }
 0x181   : > { %v341_v15 = vpop.trf.xlu0  ;;  %v372_v16 = vpop.trf.xlu1 }
 0x182   : > { %744 = vmatprep.mubr.msk.f32.mxu1 %vm225_vm0, %v341_v15 }
 0x185   : > { %v342_v17 = vpop.trf.xlu0  ;;  %v373_v18 = vpop.trf.xlu1 }
 0x186   : > { %745 = vmatmul.mubr.msk.f32.vlgmr.msra.gmra.mxu1 %vm225_vm0, %v342_v17 }
 0x187   : > { %747 = vmatprep.mubr.msk.f32.mxu1 %vm225_vm0, %v371_v14 }
 0x189   : > { %v374_v19 = vpop.trf.xlu1 }
 0x18a   : > { %748 = vmatmul.mubr.msk.f32.gmra.mxu1 %vm225_vm0, %v372_v16 }
 0x18b   : > { %750 = vmatprep.mubr.msk.f32.mxu1 %vm225_vm0, %v373_v18 }
 0x18e   : > { %751 = vmatmul.mubr.msk.f32.gmra.mxu1 %vm225_vm0, %v374_v19 }
 0x23e   : > { %v743_v20 = vpop.f32.mrf.mxu0 }
 0x240   : > { %v479_v21 = vpop.f32.mrf.mxu0 }
 0x241   : > { %518 = vxpose.xlu0.b32.start [1/4] (short) (narrow) %v479_v21, 32 }
 0x245   : > { %519 = vxpose.xlu0.b32.cont [2/4] (short) (narrow) %v743_v20, 32 }
 0x246   : > { %v746_v22 = vpop.f32.mrf.mxu1 }
 0x248   : > { %v489_v23 = vpop.f32.mrf.mxu1 }
 0x249   : > { %520 = vxpose.xlu0.b32.cont [3/4] (short) (narrow) %v489_v23, 32 }
 0x24a   : > { %v749_v24 = vpop.f32.mrf.mxu1 }
 0x24c   : > { %v499_v25 = vpop.f32.mrf.mxu1 }
 0x24d   : > { %550 = vxpose.xlu1.b32.start [1/4] (short) (narrow) %v499_v25, 32  ;;  %521 = vxpose.xlu0.b32.end [4/4] (short) (narrow) %v746_v22, 32 }
 0x24e   : > { %v752_v26 = vpop.f32.mrf.mxu1 }
 0x250   : > { %v509_v27 = vpop.f32.mrf.mxu1 }
 0x251   : > { %551 = vxpose.xlu1.b32.cont [2/4] (short) (narrow) %v749_v24, 32 }
 0x255   : > { %552 = vxpose.xlu1.b32.cont [3/4] (short) (narrow) %v509_v27, 32 }
 0x259   : > { %553 = vxpose.xlu1.b32.end [4/4] (short) (narrow) %v752_v26, 32 }
 0x2bd   : > { %v534_v28 = vpop.trf.xlu0 }
 0x2be   : > { %583 = vst.msk [vmem:[%s216_s28] sm:$0xff] %vm582_vm1, %v534_v28 }
 0x2c1   : > { %v535_v29 = vpop.trf.xlu0 }
 0x2c2   : > { %584 = vst.msk [vmem:[%s216_s28 + $0x8] sm:$0xff] %vm582_vm1, %v535_v29 }
 0x2c5   : > { %v536_v30 = vpop.trf.xlu0 }
 0x2c6   : > { %585 = vst.msk [vmem:[%s216_s28 + $0x10] sm:$0xff] %vm582_vm1, %v536_v30 }
 0x2c9   : > { %v566_v31 = vpop.trf.xlu1  ;;  %v537_v32 = vpop.trf.xlu0 }
 0x2ca   : > { %587 = vst.msk [vmem:[%s216_s28 + $0x20] sm:$0xff] %vm582_vm1, %v566_v31  ;;  %586 = vst.msk [vmem:[%s216_s28 + $0x18] sm:$0xff] %vm582_vm1, %v537_v32 }
 0x2cd   : > { %v567_v33 = vpop.trf.xlu1 }
 0x2ce   : > { %588 = vst.msk [vmem:[%s216_s28 + $0x28] sm:$0xff] %vm582_vm1, %v567_v33 }
 0x2d1   : > { %v568_v34 = vpop.trf.xlu1 }
 0x2d2   : > { %589 = vst.msk [vmem:[%s216_s28 + $0x30] sm:$0xff] %vm582_vm1, %v568_v34 }
 0x2d5   : > { %v569_v35 = vpop.trf.xlu1 }
 0x2d6   : > { %590 = vst.msk [vmem:[%s216_s28 + $0x38] sm:$0xff] %vm582_vm1, %v569_v35 }
 0x2d7   : > { %849 = shalt.err (!%p846_p9)
}
 0x2d8   : > { %s850_s10 = scalar_lea.hbm %s1075_s12, 1024  ;;  %s854_s19 = scalar_lea.hbm %s1122_s4, 4096 }
 0x2d9   : > { %p851_p13 = scmp.ne.s32.totalorder %s1075_s12, %s850_s10  ;;  %p855_p2 = scmp.lt.s32.totalorder %s1075_s12, %s1122_s4 }
 0x2da   : > { %p856_p3 = scmp.lt.s32.totalorder %s854_s19, %s850_s10 }
 0x2db   : > { %p852_p1 = pnand %p851_p13, %p1131_p11 }
 0x2dc   : > { %p857_p6 = por %p856_p3, %p855_p2 }
 0x2dd   : > { %p853_p0 = pneg %p852_p1 }
 0x2df   : > { %p858_p10 = pnand %p857_p6, %p853_p0 }
 0x2e1   : > { %861 = shalt.err (!%p858_p10)
}
 0x2e2   : > { %s906_s24 = smov 128   ;;  %s907_s28 = smov 8  }
 0x2e3   : > { %759 = dma.vmem_to_hbm [thread:$0]  (%p1131_p11), %s1069_s29, 1024, %s1075_s12, %s592_s13, %s906_s24, %s906_s24, %s907_s28  }
 0x2e4 PF: > { %p770_p12 = scmp.ge.s32.totalorder %s900_s1, 2  ;;  %s621_s30 = sand.u32 1, %s888_s15  }
 0x2e5   : > { %p1132_p4 = scmp.ne.s32.totalorder %s1128_s27, 0  ;;  %s622_s5 = scalar_lea.sflag [#allocation4], %s621_s30 }
 0x2e7   : > { %p766_p5 = pnand %p770_p12, %p1132_p4 }
 0x2e9   : > { %p767_p7 = pneg %p766_p5 }
 0x2eb   : > { %883 = dma.done.wait (%p767_p7), %s622_s5, 1024  }
 0x2ec   : > { %885 = vsyncadd (%p767_p7), %s622_s5, 4294966272  ;;  %p17_p8 = scmp.ge.s32.totalorder %s958_s20, 6   ;;  %s1133_s15 = smov %s892_s16 }
 0x2ed   : > { %s1134_s16 = smov %s896_s17  ;;  %s1135_s17 = smov %s970_s23 }
 0x2ee   : > { %s1136_s1 = smov %s958_s20  ;;  %19 = sbr.rel (!%p17_p8) target bundleno = 5 (0x5), region = 81 }
 0x2f3   :  { %627 = vsyncpa [#allocation3], 1 }
 0x2f4   :  { %629 = vsyncpa [#allocation3 + $0x1], 1 }
 0x2f5   :  { %630 = vsyncpa [#allocation4], 1 }
 0x2f6   :  { %632 = vsyncpa [#allocation4 + $0x1], 1 }

// kernel: _resize_planes.1
= control target key start
LH: loop header
LB: loop body
LE: loop exit
PB: predicated region body
PF: predicated region fallthrough
CT: control target
= control target key end

     0   :  { %9 = vsyncpa [#allocation3], 0  ;;  %s1056_s0 = inlined_call_operand.hbm [shape: f32[8,16,16], index: 0, kind: input, shape index: {}]   ;;  %s1057_s1 = inlined_call_operand.vmem [shape: f32[32,16], index: 1, kind: input, shape index: {}]   ;;  %s1058_s2 = inlined_call_operand.vmem [shape: f32[16,32], index: 2, kind: input, shape index: {}]   ;;  %s1059_s3 = inlined_call_operand.vmem [shape: f32[16,32], index: 3, kind: input, shape index: {}]   ;;  %s1060_s4 = inlined_call_operand.hbm [shape: f32[8,32,32], index: 4, kind: output, shape index: {}]  }
   0x1   :  { %11 = vsyncpa [#allocation3 + $0x1], 0 }
   0x2   :  { %12 = vsyncpa [#allocation4], 0 }
   0x3   :  { %14 = vsyncpa [#allocation4 + $0x1], 0  ;;  %s865_s15 = smov 0   ;;  %s867_s16 = smov 0  }
   0x4   :  { %s869_s17 = smov 0   ;;  %s871_s18 = smov 0  }
   0x5 LB: > { %s886_s2 = sadd.s32 4294967295, %s832_s18   ;;  %s606_s19 = sadd.s32 4294967294, %s832_s18   ;;  %s832_s18 = sphi %s871_s18, %s1074_s18   ;;  %s828_s17 = sphi %s869_s17, %s1073_s17   ;;  %s824_s16 = sphi %s867_s16, %s1072_s16   ;;  %s820_s15 = sphi %s865_s15, %s1071_s15  }
   0x6   : > { %s890_s20 = sadd.s32 1, %s832_s18   ;;  %s27_s21 = sadd.s32 1, %s828_s17 }
   0x7   : > { %s24_s22 = ssub.s32 %s832_s18, %s890_s20  ;;  %p34_p0 = scmp.ne.s32.totalorder %s828_s17, %s824_s16 }
   0x8   : > { %p25_p1 = scmp.eq.s32.totalorder %s24_s22, 0  ;;  %p35_p2 = scmp.eq.s32.totalorder %s832_s18, 0 }
   0x9   : > { %p40_p3 = scmp.ne.s32.totalorder %s824_s16, %s820_s15  ;;  %p41_p4 = scmp.eq.s32.totalorder %s886_s2, 0 }
   0xa   : > { %s902_s23 = scalar_select %p25_p1, %s828_s17, %s27_s21  }
   0xb   : > { %p904_p5 = por %p35_p2, %p34_p0  ;;  %p908_p6 = por %p41_p4, %p40_p3 }
   0xc   : > { %p127_p7 = scmp.eq.s32.totalorder %s886_s2, 3  ;;  %p133_p8 = scmp.eq.s32.totalorder %s606_s19, 3 }
   0xd   : > { %s1064_s25 = scalar_select %p908_p6, 1, 0 }
   0xe   : > { %p702_p9 = scmp.lt.s32.totalorder %s832_s18, 4  ;;  %p914_p10 = por %p127_p7, %p34_p0 }
   0xf   : > { %p918_p11 = por %p133_p8, %p40_p3  ;;  %s162_s28 = sand.u32 1, %s828_s17  }
  0x10   : > { %s1065_s26 = scalar_select %p914_p10, 1, 0 }
  0x11   : > { %s1066_s27 = scalar_select %p918_p11, 1, 0 }
  0x12   : > { %s635_s29 = sshll.u32 %s832_s18, 9  ;;  %s609_s30 = sshll.u32 %s162_s28, 5 }
  0x13   : > { %s927_s7 = scalar_lea.hbm %s1056_s0, %s635_s29  ;;  %s166_s8 = scalar_lea.vmem [#allocation2], %s609_s30 }
  0x14   : > { %s174_s9 = sshll.u32 %s166_s8, 4  ;;  %p931_p12 = pnand %p702_p9, %p904_p5  ;;  %s935_s9 = int_to_ptr.vmem [resolvable:$true] %s174_s9 }
  0x15   : > { %s937_s11 = scalar_lea.sflag [#allocation3], %s162_s28  ;;  %s740_s12 = scalar_lea.hbm %s927_s7, 512 }
  0x16   : > { %p741_p13 = scmp.ne.s32.totalorder %s927_s7, %s740_s12  ;;  %p742_p0 = pneg %p931_p12 }
  0x17   : > { %s745_s19 = scalar_lea.hbm %s1056_s0, 2048  ;;  %p746_p3 = scmp.lt.s32.totalorder %s927_s7, %s1056_s0 }
  0x18   : > { %p743_p1 = pnand %p742_p0, %p741_p13  ;;  %p747_p4 = scmp.lt.s32.totalorder %s745_s19, %s740_s12 }
  0x1a   : > { %p744_p2 = pneg %p743_p1  ;;  %p748_p5 = por %p747_p4, %p746_p3 }
  0x1c   : > { %p749_p7 = pnand %p748_p5, %p744_p2 }
  0x1e   : > { %752 = shalt.err (!%p749_p7)
}
  0x1f   : > { %s753_s24 = scalar_lea.vmem %s935_s9, 512  ;;  %s834_s28 = smov [#allocation2]  }
  0x20   : > { %p754_p8 = scmp.ne.s32.totalorder %s935_s9, %s753_s24  ;;  %s758_s29 = sshll.u32 %s834_s28, 4  ;;  %s759_s29 = int_to_ptr.vmem [resolvable:$false] %s758_s29 }
  0x21   : > { %s760_s30 = scalar_lea.vmem %s759_s29, 1024  ;;  %p761_p1 = scmp.lt.s32.totalorder %s935_s9, %s759_s29 }
  0x22   : > { %p756_p9 = pnand %p754_p8, %p742_p0  ;;  %p762_p11 = scmp.lt.s32.totalorder %s760_s30, %s753_s24 }
  0x24   : > { %p757_p13 = pneg %p756_p9  ;;  %p763_p10 = por %p762_p11, %p761_p1 }
  0x26   : > { %p764_p6 = pnand %p763_p10, %p757_p13 }
  0x28   : > { %767 = shalt.err (!%p764_p6)
}
  0x29   : > { %s835_s5 = smov 128   ;;  %s836_s6 = smov 8  }
  0x2a   : > { %697 = dma.hbm_to_vmem [thread:$0]  (!%p931_p12), %s927_s7, 512, %s935_s9, %s937_s11, %s835_s5, %s835_s5, %s836_s6  }
  0x2b   : > { %p613_p0 = scmp.ge.s32.totalorder %s832_s18, 1  ;;  %p182_p2 = scmp.lt.s32.totalorder %s832_s18, 5 }
  0x2d   : > { %p183_p3 = pnand %p613_p0, %p182_p2 }
  0x2e   : > { %s961_s8 = sand.u32 (!%p183_p3), 1, %s824_s16   ;;  %p1068_p6 = scmp.ne.s32.totalorder (!%p183_p3), %s1064_s25, 0 }
  0x2f   : > { %186 = sbr.rel (%p183_p3) target bundleno = 469 (0x1d5), region = 36  ;;  %s614_s12 = sshll.u32 (!%p183_p3), %s961_s8, 5 }
  0x30   : > { %s189_s13 = scalar_lea.sflag (!%p183_p3), [#allocation3], %s961_s8  ;;  %s192_s14 = scalar_lea.vmem (!%p183_p3), [#allocation2], %s614_s12 }
  0x34   : > { %811 = dma.done.wait (%p1068_p6), %s189_s13, 512  }
  0x35   : > { %813 = vsyncadd (%p1068_p6), %s189_s13, 4294966784  ;;  %v224_v0 = vld [vmem:[%s1059_s3 + $0x8] sm:$0xff]  ;;  %v223_v1 = vld [vmem:[%s1059_s3] sm:$0xff]  ;;  %vm225_vm0 = vcmask 130048   ;;  %s615_s5 = sshll.u32 %s961_s8, 6  ;;  %vm509_vm1 = vcmask 261120  }
  0x36   : > { %656 = vmatprep.subr.mxu0 %v224_v0  ;;  %686 = vmatprep.subr.mxu1 %v224_v0  ;;  %v219_v2 = vld [vmem:[%s192_s14] sm:$0xff]  ;;  %v221_v3 = vld [vmem:[%s192_s14 + $0x10] sm:$0xff]  ;;  %v220_v4 = vld [vmem:[%s192_s14 + $0x8] sm:$0xff]  ;;  %s216_s6 = scalar_lea.vmem [#allocation5], %s615_s5  ;;  %s637_s13 = sshll.u32 %s886_s2, 10 }
  0x37   : > { %657 = vmatpush3.msra.mxu0 %v224_v0  ;;  %688 = vmatpush3.msra.mxu1 %v224_v0  ;;  %v222_v5 = vld [vmem:[%s192_s14 + $0x18] sm:$0xff]  ;;  %v323_v6 = vld [vmem:[%s1057_s1] sm:$0xff]  ;;  %v324_v11 = vld [vmem:[%s1057_s1 + $0x8] sm:$0xff]  ;;  %s533_s12 = sshll.u32 %s216_s6, 4  ;;  %s1010_s7 = scalar_lea.hbm %s1060_s4, %s637_s13  ;;  %s1003_s12 = int_to_ptr.vmem [resolvable:$true] %s533_s12 }
  0x38   : > { %658 = vmatprep.subr.mxu0 %v223_v1  ;;  %687 = vmatprep.subr.mxu1 %v223_v1  ;;  %v325_v12 = vld [vmem:[%s1057_s1 + $0x10] sm:$0xff]  ;;  %v326_v13 = vld [vmem:[%s1057_s1 + $0x18] sm:$0xff]  ;;  %s519_s2 = scalar_lea.sflag [#allocation4], %s961_s8  ;;  %s768_s9 = scalar_lea.vmem %s1003_s12, 1024 }
  0x39   : > { %659 = vmatpush3.msra.mxu0 %v223_v1  ;;  %689 = vmatpush3.msra.mxu1 %v223_v1  ;;  %p769_p10 = scmp.ne.s32.totalorder %s1003_s12, %s768_s9  ;;  %p1069_p11 = scmp.ne.s32.totalorder %s1065_s26, 0 }
  0x3a   : > { %660 = vmatprep.mubr.msk.f32.mxu0 %vm225_vm0, %v219_v2  ;;  %663 = vmatprep.mubr.msk.f32.mxu1 %vm225_vm0, %v221_v3  ;;  %s837_s11 = smov [#allocation5]  }
  0x3b   : > { %661 = vmatmul.mubr.msk.f32.vlgmr.msra.gmra.mxu0 %vm225_vm0, %v220_v4  ;;  %664 = vmatmul.mubr.msk.f32.vlgmr.msra.gmra.mxu1 %vm225_vm0, %v222_v5  ;;  %p770_p12 = pnand %p769_p10, %p1069_p11  ;;  %s772_s25 = sshll.u32 %s837_s11, 4  ;;  %s773_s25 = int_to_ptr.vmem [resolvable:$false] %s772_s25 }
  0x3c   : > { %670 = vmatprep.mubr.msk.f32.mxu1 %vm225_vm0, %v323_v6  ;;  %680 = vmatprep.mubr.msk.f32.mxu0 %vm225_vm0, %v323_v6  ;;  %s774_s19 = scalar_lea.vmem %s773_s25, 2048  ;;  %p775_p5 = scmp.lt.s32.totalorder %s1003_s12, %s773_s25 }
  0x3d   : > { %p771_p4 = pneg %p770_p12  ;;  %p776_p7 = scmp.lt.s32.totalorder %s774_s19, %s768_s9 }
  0x3f   : > { %p777_p8 = por %p776_p7, %p775_p5 }
  0x41   : > { %p778_p9 = pnand %p777_p8, %p771_p4 }
  0xfb   : > { %v662_v7 = vpop.f32.mrf.mxu0  ;;  %v665_v8 = vpop.f32.mrf.mxu1 }
  0xfc   : > { %666 = vmatprep.subr.mxu1 %v662_v7  ;;  %676 = vmatprep.subr.mxu0 %v665_v8 }
  0xfd   : > { %v304_v9 = vpop.f32.mrf.mxu0  ;;  %v314_v10 = vpop.f32.mrf.mxu1  ;;  %667 = vmatpush3.msra.mxu1 %v662_v7  ;;  %677 = vmatpush3.msra.mxu0 %v665_v8 }
  0xfe   : > { %668 = vmatprep.subr.mxu1 %v304_v9  ;;  %678 = vmatprep.subr.mxu0 %v314_v10 }
  0xff   : > { %669 = vmatpush3.msra.mxu1 %v304_v9  ;;  %679 = vmatpush3.msra.mxu0 %v314_v10 }
 0x100   : > { %671 = vmatmul.mubr.msk.f32.vlgmr.msra.gmra.mxu1 %vm225_vm0, %v324_v11  ;;  %681 = vmatmul.mubr.msk.f32.vlgmr.msra.gmra.mxu0 %vm225_vm0, %v324_v11 }
 0x101   : > { %673 = vmatprep.mubr.msk.f32.mxu1 %vm225_vm0, %v325_v12  ;;  %683 = vmatprep.mubr.msk.f32.mxu0 %vm225_vm0, %v325_v12 }
 0x104   : > { %674 = vmatmul.mubr.msk.f32.gmra.mxu1 %vm225_vm0, %v326_v13  ;;  %684 = vmatmul.mubr.msk.f32.gmra.mxu0 %vm225_vm0, %v326_v13 }
 0x1c0   : > { %v672_v14 = vpop.f32.mrf.mxu1  ;;  %v682_v15 = vpop.f32.mrf.mxu0 }
 0x1c1   : > { %511 = vst.msk [vmem:[%s216_s6 + $0x8] sm:$0xff] %vm509_vm1, %v672_v14  ;;  %515 = vst.msk [vmem:[%s216_s6 + $0x28] sm:$0xff] %vm509_vm1, %v682_v15 }
 0x1c2   : > { %v405_v16 = vpop.f32.mrf.mxu1  ;;  %v490_v17 = vpop.f32.mrf.mxu0 }
 0x1c3   : > { %510 = vst.msk [vmem:[%s216_s6] sm:$0xff] %vm509_vm1, %v405_v16  ;;  %514 = vst.msk [vmem:[%s216_s6 + $0x20] sm:$0xff] %vm509_vm1, %v490_v17 }
 0x1c4   : > { %v675_v18 = vpop.f32.mrf.mxu1  ;;  %v685_v19 = vpop.f32.mrf.mxu0 }
 0x1c5   : > { %513 = vst.msk [vmem:[%s216_s6 + $0x18] sm:$0xff] %vm509_vm1, %v675_v18  ;;  %517 = vst.msk [vmem:[%s216_s6 + $0x38] sm:$0xff] %vm509_vm1, %v685_v19 }
 0x1c6   : > { %v415_v20 = vpop.f32.mrf.mxu1  ;;  %v500_v21 = vpop.f32.mrf.mxu0 }
 0x1c7   : > { %512 = vst.msk [vmem:[%s216_s6 + $0x10] sm:$0xff] %vm509_vm1, %v415_v20  ;;  %516 = vst.msk [vmem:[%s216_s6 + $0x30] sm:$0xff] %vm509_vm1, %v500_v21 }
 0x1c8   : > { %781 = shalt.err (!%p778_p9)
}
 0x1c9   : > { %s782_s21 = scalar_lea.hbm %s1010_s7, 1024  ;;  %s786_s28 = scalar_lea.hbm %s1060_s4, 4096 }
 0x1ca   : > { %p783_p13 = scmp.ne.s32.totalorder %s1010_s7, %s782_s21  ;;  %p787_p2 = scmp.lt.s32.totalorder %s1010_s7, %s1060_s4 }
 0x1cb   : > { %p788_p3 = scmp.lt.s32.totalorder %s786_s28, %s782_s21 }
 0x1cc   : > { %p784_p1 = pnand %p783_p13, %p1069_p11 }
 0x1cd   : > { %p789_p6 = por %p788_p3, %p787_p2 }
 0x1ce   : > { %p785_p0 = pneg %p784_p1 }
 0x1d0   : > { %p790_p10 = pnand %p789_p6, %p785_p0 }
 0x1d2   : > { %793 = shalt.err (!%p790_p10)
}
 0x1d3   : > { %s838_s5 = smov 128   ;;  %s839_s6 = smov 8  }
 0x1d4   : > { %692 = dma.vmem_to_hbm [thread:$0]  (%p1069_p11), %s1003_s12, 1024, %s1010_s7, %s519_s2, %s838_s5, %s838_s5, %s839_s6  }
 0x1d5 PF: > { %p703_p12 = scmp.ge.s32.totalorder %s832_s18, 2  ;;  %s548_s13 = sand.u32 1, %s820_s15  }
 0x1d6   : > { %p1070_p4 = scmp.ne.s32.totalorder %s1066_s27, 0  ;;  %s549_s14 = scalar_lea.sflag [#allocation4], %s548_s13 }
 0x1d8   : > { %p699_p5 = pnand %p703_p12, %p1070_p4 }
 0x1da   : > { %p700_p7 = pneg %p699_p5 }
 0x1dc   : > { %815 = dma.done.wait (%p700_p7), %s549_s14, 1024  }
 0x1dd   : > { %817 = vsyncadd (%p700_p7), %s549_s14, 4294966272  ;;  %p17_p8 = scmp.ge.s32.totalorder %s890_s20, 6   ;;  %s1071_s15 = smov %s824_s16 }
 0x1de   : > { %s1072_s16 = smov %s828_s17  ;;  %s1073_s17 = smov %s902_s23 }
 0x1df   : > { %s1074_s18 = smov %s890_s20  ;;  %19 = sbr.rel (!%p17_p8) target bundleno = 5 (0x5), region = 81 }
 0x1e4   :  { %554 = vsyncpa [#allocation3], 1 }
 0x1e5   :  { %556 = vsyncpa [#allocation3 + $0x1], 1 }
 0x1e6   :  { %557 = vsyncpa [#allocation4], 1 }
 0x1e7   :  { %559 = vsyncpa [#allocation4 + $0x1], 1 }

</bundles_post_ra>
